<compile_context>
chip_gen: v5e
topology: v5e:2x2
jax: 0.10.0
libtpu: 0.0.40
codegen_flags: <defaults>
</compile_context>

<pallas_src>
import math

import jax
import jax.numpy as jnp
from jax.experimental import pallas as pl
from jax.experimental.pallas import tpu as pltpu

EPS = 1e-5  # torch.nn.LayerNorm default eps


def rnn_classifier_kernel(
    idx_ref,      # [S*bt, 1] int32 token ids, time-major within the batch tile (row = t*bt + b)
    pre_tbl_ref,  # [V, H]    folded table: LN1(embedding) @ W_ih + (b_ih + b_hh)
    w_hh_ref,     # [H, H]    (transposed torch weight_hh_l0)
    fc_slab_ref,  # [H+1, Cp] rows 0..H-1 = gamma-folded fc weight, row H = folded bias
    out_ref,      # [bt, Cp]
):
    SB = idx_ref.shape[0]
    V, H = pre_tbl_ref.shape
    bt = out_ref.shape[0]
    S = SB // bt

    # --- Embedding + LN1 + input projection fused: one-hot gather from the folded table. ---
    lane_ids = jax.lax.broadcasted_iota(jnp.int32, (SB, V), 1)
    onehot = (idx_ref[...] == lane_ids).astype(jnp.float32)                     # [SB, V]
    pre = jnp.dot(onehot, pre_tbl_ref[...], preferred_element_type=jnp.float32)  # [SB, H]

    w_hh = w_hh_ref[...]

    # --- Serial recurrence: only h @ W_hh + add + tanh per step; fully unrolled (static S). ---
    h = jnp.zeros((bt, H), jnp.float32)
    for t in range(S):
        p_t = pre[t * bt:(t + 1) * bt, :]               # static, sublane-aligned slice
        h = jnp.tanh(p_t + jnp.dot(h, w_hh, preferred_element_type=jnp.float32))

    # --- LN2 (gamma/beta already folded into the head): normalize only, then FC. ---
    mu = jnp.mean(h, axis=-1, keepdims=True)
    var = jnp.mean((h - mu) ** 2, axis=-1, keepdims=True)
    h_n = (h - mu) * jax.lax.rsqrt(var + EPS)

    fc_w = fc_slab_ref[0:H, :]            # [H, Cp]
    fc_b = fc_slab_ref[H:H + 1, :]        # [1, Cp]
    out_ref[...] = jnp.dot(h_n, fc_w, preferred_element_type=jnp.float32) + fc_b


def prepare_params(params):
    """One-time weight prep (cache the result alongside the params)."""
    hi = jax.lax.Precision.HIGHEST

    # Fold LN1 + W_ih + (b_ih + b_hh) into a per-token table [V, H].
    emb = params["embedding"]
    mu = jnp.mean(emb, axis=-1, keepdims=True)
    var = jnp.mean((emb - mu) ** 2, axis=-1, keepdims=True)
    emb_n = (emb - mu) * jax.lax.rsqrt(var + EPS) * params["ln1_g"] + params["ln1_b"]
    pre_table = (
        jnp.dot(emb_n, params["w_ih"], precision=hi) + params["b_ih"] + params["b_hh"]
    )                                                                    # [V, H]

    # Fold LN2 gamma/beta into the classifier head; pack weight+bias into one slab.
    H, C = params["fc_w"].shape
    Cp = ((C + 127) // 128) * 128
    fc_w = params["ln2_g"].reshape(H, 1) * params["fc_w"]                # [H, C]
    fc_b = jnp.dot(params["ln2_b"], params["fc_w"], precision=hi) + params["fc_b"]  # [1, C]
    fc_slab = jnp.concatenate([fc_w, fc_b], axis=0)                      # [H+1, C]
    fc_slab = jnp.pad(fc_slab, ((0, 0), (0, Cp - C)))                    # [H+1, Cp] (pad cols -> 0 logits)

    return {"pre_table": pre_table, "w_hh": params["w_hh"], "fc_slab": fc_slab}


def names_classifier_rnn_forward(indices, prepped, num_classes, *, batch_tile=128):
    """indices: [B, S] int token ids.  Returns logits [B, num_classes] float32."""
    B, S = indices.shape
    V, H = prepped["pre_table"].shape
    Hp1, Cp = prepped["fc_slab"].shape
    C = num_classes

    # Batch tiling: tiles of bt rows (multiple of 8 sublanes); grid over tiles is
    # megacore-parallel on v7x and collapses to a single invocation at small B.
    Bp8 = max(8, ((B + 7) // 8) * 8)
    bt = min(((batch_tile + 7) // 8) * 8, Bp8)
    nt = -(-Bp8 // bt)
    Bp = nt * bt

    # Tiny int32 glue: pad batch with padding_idx=0, go time-major within each tile.
    # NOTE: out-of-range ids produce an all-zero one-hot row (pre = 0) rather than erroring.
    idx = jnp.pad(indices.astype(jnp.int32), ((0, Bp - B), (0, 0)))           # [Bp, S]
    idx = idx.reshape(nt, bt, S).transpose(0, 2, 1).reshape(nt * S * bt, 1)   # [nt*S*bt, 1]

    grid_spec = pltpu.PrefetchScalarGridSpec(
        num_scalar_prefetch=0,
        grid=(nt,),
        in_specs=[
            pl.BlockSpec((S * bt, 1), lambda i: (i, 0)),   # per-tile token ids
            pl.BlockSpec((V, H), lambda i: (0, 0)),        # resident weights
            pl.BlockSpec((H, H), lambda i: (0, 0)),
            pl.BlockSpec((Hp1, Cp), lambda i: (0, 0)),
        ],
        out_specs=pl.BlockSpec((bt, Cp), lambda i: (i, 0)),
    )

    out = pl.pallas_call(
        rnn_classifier_kernel,
        grid_spec=grid_spec,
        out_shape=jax.ShapeDtypeStruct((Bp, Cp), jnp.float32),
        compiler_params=pltpu.CompilerParams(dimension_semantics=("parallel",)),
    )(idx, prepped["pre_table"], prepped["w_hh"], prepped["fc_slab"])
    return out[:B, :C]


def _reference_forward(indices, params):
    """Pure-JAX reference of the torch module's forward (for correctness check)."""
    hi = jax.lax.Precision.HIGHEST

    def ln(x, g, b):
        mu = jnp.mean(x, axis=-1, keepdims=True)
        var = jnp.mean((x - mu) ** 2, axis=-1, keepdims=True)
        return (x - mu) * jax.lax.rsqrt(var + EPS) * g + b

    emb = params["embedding"][indices]                                 # [B, S, E]
    x = ln(emb, params["ln1_g"], params["ln1_b"])
    B, S, _E = x.shape
    H = params["w_hh"].shape[0]
    h = jnp.zeros((B, H), jnp.float32)
    for t in range(S):
        h = jnp.tanh(
            jnp.dot(x[:, t, :], params["w_ih"], precision=hi) + params["b_ih"]
            + jnp.dot(h, params["w_hh"], precision=hi) + params["b_hh"]
        )
    h = ln(h, params["ln2_g"], params["ln2_b"])
    return jnp.dot(h, params["fc_w"], precision=hi) + params["fc_b"]


def init_params(key, V, C, E, H):
    """Deterministic synthetic init matching the torch module's parameter shapes."""
    keys = jax.random.split(key, 8)
    k_rnn = 1.0 / math.sqrt(H)

    embedding = jax.random.normal(keys[0], (V, E), jnp.float32)
    embedding = embedding.at[0].set(0.0)  # padding_idx=0 -> zero row

    return {
        "embedding": embedding,
        "ln1_g": jnp.ones((1, E), jnp.float32),
        "ln1_b": jnp.zeros((1, E), jnp.float32),
        # torch stores weight_ih_l0 as [H, E]; we store the transpose [E, H]
        "w_ih": jax.random.uniform(keys[1], (E, H), jnp.float32, -k_rnn, k_rnn),
        "w_hh": jax.random.uniform(keys[2], (H, H), jnp.float32, -k_rnn, k_rnn),
        "b_ih": jax.random.uniform(keys[3], (1, H), jnp.float32, -k_rnn, k_rnn),
        "b_hh": jax.random.uniform(keys[4], (1, H), jnp.float32, -k_rnn, k_rnn),
        "ln2_g": jnp.ones((1, H), jnp.float32),
        "ln2_b": jnp.zeros((1, H), jnp.float32),
        # torch fc.weight is [C, H]; we store the transpose [H, C]
        "fc_w": jax.random.uniform(keys[5], (H, C), jnp.float32, -k_rnn, k_rnn),
        "fc_b": jax.random.uniform(keys[6], (1, C), jnp.float32, -k_rnn, k_rnn),
    }


if __name__ == "__main__":
    # Small config consistent with the module:
    # vocab_size=32, class_size=8, embedding_size=32, hidden_size=32,
    # num_layers=1, bidirectional=False, activation='tanh'
    # (dropout irrelevant: eval-mode forward; nn.RNN dropout only applies between layers)
    V, C, E, H = 32, 8, 32, 32
    B, S = 2, 8

    key = jax.random.PRNGKey(0)
    k_params, k_idx, k_idx2 = jax.random.split(key, 3)

    params = init_params(k_params, V, C, E, H)
    prepped = jax.tree_util.tree_map(jnp.asarray, prepare_params(params))  # one-time weight prep

    # --- Small case (single batch tile, grid=(1,)) ---
    indices = jax.random.randint(k_idx, (B, S), 0, V, dtype=jnp.int32)     # [B, S]
    fwd = jax.jit(lambda idx: names_classifier_rnn_forward(idx, prepped, C))
    logits = jax.block_until_ready(fwd(indices))

    assert logits.shape == (B, C), logits.shape
    assert logits.dtype == jnp.float32, logits.dtype
    ref = _reference_forward(indices, params)
    assert jnp.allclose(logits, ref, atol=2e-2, rtol=2e-2), (
        float(jnp.max(jnp.abs(logits - ref)))
    )

    # --- Larger batch exercising the multi-tile, megacore-parallel grid path ---
    B2 = 64
    indices2 = jax.random.randint(k_idx2, (B2, S), 0, V, dtype=jnp.int32)
    fwd2 = jax.jit(lambda idx: names_classifier_rnn_forward(idx, prepped, C, batch_tile=32))
    logits2 = jax.block_until_ready(fwd2(indices2))
    ref2 = _reference_forward(indices2, params)
    assert logits2.shape == (B2, C), logits2.shape
    assert jnp.allclose(logits2, ref2, atol=2e-2, rtol=2e-2), (
        float(jnp.max(jnp.abs(logits2 - ref2)))
    )

    print("KERNEL_OK")
</pallas_src>

<mosaic_0001>
module attributes {stable_mosaic.version = 11 : i64} {
  func.func @rnn_classifier_kernel(%arg0: i32, %arg1: memref<64x1xi32, #tpu.memory_space<vmem>>, %arg2: memref<32x32xf32, #tpu.memory_space<vmem>>, %arg3: memref<32x32xf32, #tpu.memory_space<vmem>>, %arg4: memref<33x128xf32, #tpu.memory_space<vmem>>, %arg5: memref<8x128xf32, #tpu.memory_space<vmem>>) attributes {dimension_semantics = [#tpu.dimension_semantics<parallel>], iteration_bounds = array<i64: 1>, scalar_prefetch = 0 : i64, scratch_operands = 0 : i64, tpu.core_type = #tpu.core_type<tc>, window_params = [{transform_indices = @transform_0, window_bounds = array<i64: 64, 1>}, {pipeline_mode = #tpu.pipeline_mode<synchronous>, transform_indices = @transform_1, window_bounds = array<i64: 32, 32>}, {pipeline_mode = #tpu.pipeline_mode<synchronous>, transform_indices = @transform_2, window_bounds = array<i64: 32, 32>}, {pipeline_mode = #tpu.pipeline_mode<synchronous>, transform_indices = @transform_3, window_bounds = array<i64: 33, 128>}, {transform_indices = @transform_4, window_bounds = array<i64: 8, 128>}]} {
    %0 = tpu.iota {dimensions = array<i32: 1>} : vector<64x32xi32>
    %c0 = arith.constant 0 : index
    %c0_0 = arith.constant 0 : index
    %1 = vector.load %arg1[%c0, %c0_0] : memref<64x1xi32, #tpu.memory_space<vmem>>, vector<64x1xi32>
    %2 = vector.broadcast %1 : vector<64x1xi32> to vector<64x32xi32>
    %3 = arith.cmpi eq, %2, %0 : vector<64x32xi32>
    %4 = arith.extui %3 : vector<64x32xi1> to vector<64x32xi32>
    %5 = arith.sitofp %4 : vector<64x32xi32> to vector<64x32xf32>
    %c0_1 = arith.constant 0 : index
    %c0_2 = arith.constant 0 : index
    %6 = vector.load %arg2[%c0_1, %c0_2] : memref<32x32xf32, #tpu.memory_space<vmem>>, vector<32x32xf32>
    %cst = arith.constant dense<0.000000e+00> : vector<64x32xf32>
    %7 = tpu.matmul %5, %6, %cst {dimension_numbers = #tpu.dot_dimension_numbers<[1], [0], [0], [1], [0, 0, 1, 1], [], []>} : vector<64x32xf32>, vector<32x32xf32>, vector<64x32xf32> -> vector<64x32xf32>
    %c0_3 = arith.constant 0 : index
    %c0_4 = arith.constant 0 : index
    %8 = vector.load %arg3[%c0_3, %c0_4] : memref<32x32xf32, #tpu.memory_space<vmem>>, vector<32x32xf32>
    %cst_5 = arith.constant 0.000000e+00 : f32
    %9 = vector.broadcast %cst_5 : f32 to vector<8x32xf32>
    %10 = vector.extract_strided_slice %7 {offsets = [0, 0], sizes = [8, 32], strides = [1, 1]} : vector<64x32xf32> to vector<8x32xf32>
    %cst_6 = arith.constant dense<0.000000e+00> : vector<8x32xf32>
    %11 = tpu.matmul %9, %8, %cst_6 {dimension_numbers = #tpu.dot_dimension_numbers<[1], [0], [0], [1], [0, 0, 1, 1], [], []>} : vector<8x32xf32>, vector<32x32xf32>, vector<8x32xf32> -> vector<8x32xf32>
    %12 = arith.addf %10, %11 : vector<8x32xf32>
    %13 = math.tanh %12 : vector<8x32xf32>
    %14 = vector.extract_strided_slice %7 {offsets = [8, 0], sizes = [8, 32], strides = [1, 1]} : vector<64x32xf32> to vector<8x32xf32>
    %cst_7 = arith.constant dense<0.000000e+00> : vector<8x32xf32>
    %15 = tpu.matmul %13, %8, %cst_7 {dimension_numbers = #tpu.dot_dimension_numbers<[1], [0], [0], [1], [0, 0, 1, 1], [], []>} : vector<8x32xf32>, vector<32x32xf32>, vector<8x32xf32> -> vector<8x32xf32>
    %16 = arith.addf %14, %15 : vector<8x32xf32>
    %17 = math.tanh %16 : vector<8x32xf32>
    %18 = vector.extract_strided_slice %7 {offsets = [16, 0], sizes = [8, 32], strides = [1, 1]} : vector<64x32xf32> to vector<8x32xf32>
    %cst_8 = arith.constant dense<0.000000e+00> : vector<8x32xf32>
    %19 = tpu.matmul %17, %8, %cst_8 {dimension_numbers = #tpu.dot_dimension_numbers<[1], [0], [0], [1], [0, 0, 1, 1], [], []>} : vector<8x32xf32>, vector<32x32xf32>, vector<8x32xf32> -> vector<8x32xf32>
    %20 = arith.addf %18, %19 : vector<8x32xf32>
    %21 = math.tanh %20 : vector<8x32xf32>
    %22 = vector.extract_strided_slice %7 {offsets = [24, 0], sizes = [8, 32], strides = [1, 1]} : vector<64x32xf32> to vector<8x32xf32>
    %cst_9 = arith.constant dense<0.000000e+00> : vector<8x32xf32>
    %23 = tpu.matmul %21, %8, %cst_9 {dimension_numbers = #tpu.dot_dimension_numbers<[1], [0], [0], [1], [0, 0, 1, 1], [], []>} : vector<8x32xf32>, vector<32x32xf32>, vector<8x32xf32> -> vector<8x32xf32>
    %24 = arith.addf %22, %23 : vector<8x32xf32>
    %25 = math.tanh %24 : vector<8x32xf32>
    %26 = vector.extract_strided_slice %7 {offsets = [32, 0], sizes = [8, 32], strides = [1, 1]} : vector<64x32xf32> to vector<8x32xf32>
    %cst_10 = arith.constant dense<0.000000e+00> : vector<8x32xf32>
    %27 = tpu.matmul %25, %8, %cst_10 {dimension_numbers = #tpu.dot_dimension_numbers<[1], [0], [0], [1], [0, 0, 1, 1], [], []>} : vector<8x32xf32>, vector<32x32xf32>, vector<8x32xf32> -> vector<8x32xf32>
    %28 = arith.addf %26, %27 : vector<8x32xf32>
    %29 = math.tanh %28 : vector<8x32xf32>
    %30 = vector.extract_strided_slice %7 {offsets = [40, 0], sizes = [8, 32], strides = [1, 1]} : vector<64x32xf32> to vector<8x32xf32>
    %cst_11 = arith.constant dense<0.000000e+00> : vector<8x32xf32>
    %31 = tpu.matmul %29, %8, %cst_11 {dimension_numbers = #tpu.dot_dimension_numbers<[1], [0], [0], [1], [0, 0, 1, 1], [], []>} : vector<8x32xf32>, vector<32x32xf32>, vector<8x32xf32> -> vector<8x32xf32>
    %32 = arith.addf %30, %31 : vector<8x32xf32>
    %33 = math.tanh %32 : vector<8x32xf32>
    %34 = vector.extract_strided_slice %7 {offsets = [48, 0], sizes = [8, 32], strides = [1, 1]} : vector<64x32xf32> to vector<8x32xf32>
    %cst_12 = arith.constant dense<0.000000e+00> : vector<8x32xf32>
    %35 = tpu.matmul %33, %8, %cst_12 {dimension_numbers = #tpu.dot_dimension_numbers<[1], [0], [0], [1], [0, 0, 1, 1], [], []>} : vector<8x32xf32>, vector<32x32xf32>, vector<8x32xf32> -> vector<8x32xf32>
    %36 = arith.addf %34, %35 : vector<8x32xf32>
    %37 = math.tanh %36 : vector<8x32xf32>
    %38 = vector.extract_strided_slice %7 {offsets = [56, 0], sizes = [8, 32], strides = [1, 1]} : vector<64x32xf32> to vector<8x32xf32>
    %cst_13 = arith.constant dense<0.000000e+00> : vector<8x32xf32>
    %39 = tpu.matmul %37, %8, %cst_13 {dimension_numbers = #tpu.dot_dimension_numbers<[1], [0], [0], [1], [0, 0, 1, 1], [], []>} : vector<8x32xf32>, vector<32x32xf32>, vector<8x32xf32> -> vector<8x32xf32>
    %40 = arith.addf %38, %39 : vector<8x32xf32>
    %41 = math.tanh %40 : vector<8x32xf32>
    %cst_14 = arith.constant dense<0.000000e+00> : vector<8xf32>
    %42 = vector.multi_reduction <add>, %41, %cst_14 [1] : vector<8x32xf32> to vector<8xf32>
    %43 = vector.shape_cast %42 : vector<8xf32> to vector<8x1xf32>
    %cst_15 = arith.constant 3.200000e+01 : f32
    %44 = vector.broadcast %cst_15 : f32 to vector<8x1xf32>
    %45 = arith.divf %43, %44 : vector<8x1xf32>
    %46 = vector.broadcast %45 : vector<8x1xf32> to vector<8x32xf32>
    %47 = arith.subf %41, %46 : vector<8x32xf32>
    %48 = arith.mulf %47, %47 : vector<8x32xf32>
    %cst_16 = arith.constant dense<0.000000e+00> : vector<8xf32>
    %49 = vector.multi_reduction <add>, %48, %cst_16 [1] : vector<8x32xf32> to vector<8xf32>
    %50 = vector.shape_cast %49 : vector<8xf32> to vector<8x1xf32>
    %cst_17 = arith.constant 3.200000e+01 : f32
    %51 = vector.broadcast %cst_17 : f32 to vector<8x1xf32>
    %52 = arith.divf %50, %51 : vector<8x1xf32>
    %53 = vector.broadcast %45 : vector<8x1xf32> to vector<8x32xf32>
    %54 = arith.subf %41, %53 : vector<8x32xf32>
    %cst_18 = arith.constant 9.99999974E-6 : f32
    %55 = vector.broadcast %cst_18 : f32 to vector<8x1xf32>
    %56 = arith.addf %52, %55 : vector<8x1xf32>
    %57 = math.rsqrt %56 : vector<8x1xf32>
    %58 = vector.broadcast %57 : vector<8x1xf32> to vector<8x32xf32>
    %59 = arith.mulf %54, %58 : vector<8x32xf32>
    %c0_19 = arith.constant 0 : index
    %c0_20 = arith.constant 0 : index
    %60 = vector.load %arg4[%c0_19, %c0_20] : memref<33x128xf32, #tpu.memory_space<vmem>>, vector<32x128xf32>
    %c32 = arith.constant 32 : index
    %c0_21 = arith.constant 0 : index
    %61 = vector.load %arg4[%c32, %c0_21] : memref<33x128xf32, #tpu.memory_space<vmem>>, vector<1x128xf32>
    %cst_22 = arith.constant dense<0.000000e+00> : vector<8x128xf32>
    %62 = tpu.matmul %59, %60, %cst_22 {dimension_numbers = #tpu.dot_dimension_numbers<[1], [0], [0], [1], [0, 0, 1, 1], [], []>} : vector<8x32xf32>, vector<32x128xf32>, vector<8x128xf32> -> vector<8x128xf32>
    %63 = vector.broadcast %61 : vector<1x128xf32> to vector<8x128xf32>
    %64 = arith.addf %62, %63 : vector<8x128xf32>
    %c0_23 = arith.constant 0 : index
    %c0_24 = arith.constant 0 : index
    %65 = vector.load %arg5[%c0_23, %c0_24] : memref<8x128xf32, #tpu.memory_space<vmem>>, vector<8x128xf32>
    tpu.vector_store %arg5[%c0_23, %c0_24], %64 {strides = array<i32>} : memref<8x128xf32, #tpu.memory_space<vmem>>, vector<8x128xf32>,
    return
  }
  func.func @transform_0(%arg0: i32) -> (i32, i32) {
    %c0_i32 = arith.constant 0 : i32
    %c0_i32_0 = arith.constant 0 : i32
    return %arg0, %c0_i32 : i32, i32
  }
  func.func @transform_1(%arg0: i32) -> (i32, i32) {
    %c0_i32 = arith.constant 0 : i32
    %c0_i32_0 = arith.constant 0 : i32
    %c0_i32_1 = arith.constant 0 : i32
    return %c0_i32, %c0_i32_0 : i32, i32
  }
  func.func @transform_2(%arg0: i32) -> (i32, i32) {
    %c0_i32 = arith.constant 0 : i32
    %c0_i32_0 = arith.constant 0 : i32
    %c0_i32_1 = arith.constant 0 : i32
    return %c0_i32, %c0_i32_0 : i32, i32
  }
  func.func @transform_3(%arg0: i32) -> (i32, i32) {
    %c0_i32 = arith.constant 0 : i32
    %c0_i32_0 = arith.constant 0 : i32
    %c0_i32_1 = arith.constant 0 : i32
    return %c0_i32, %c0_i32_0 : i32, i32
  }
  func.func @transform_4(%arg0: i32) -> (i32, i32) {
    %c0_i32 = arith.constant 0 : i32
    %c0_i32_0 = arith.constant 0 : i32
    return %arg0, %c0_i32 : i32, i32
  }
}

</mosaic_0001>

<bundles_post_ra>
// kernel: _lambda_.1
= control target key start
LH: loop header
LB: loop body
LE: loop exit
PB: predicated region body
PF: predicated region fallthrough
CT: control target
= control target key end

     0   :  { %9 = vsyncpa [#allocation3], 0  ;;  %s517_s18 = smov [#allocation2]   ;;  %s518_s20 = smov 128   ;;  %s663_s0 = inlined_call_operand.vmem [shape: s32[64,1], index: 0, kind: input, shape index: {}]   ;;  %s664_s1 = inlined_call_operand.hbm [shape: f32[32,32], index: 1, kind: input, shape index: {}]   ;;  %s665_s2 = inlined_call_operand.vmem [shape: f32[32,32], index: 2, kind: input, shape index: {}]   ;;  %s666_s3 = inlined_call_operand.vmem [shape: f32[33,128], index: 3, kind: input, shape index: {}]   ;;  %s667_s4 = inlined_call_operand.vmem [shape: f32[8,128], index: 4, kind: output, shape index: {}]  }
   0x1   :  { %s16_s17 = sshll.u32 %s664_s1, 4  ;;  %s18_s19 = sshll.u32 %s517_s18, 4  ;;  %s17_s17 = int_to_ptr.hbm [resolvable:$true] %s16_s17  ;;  %s19_s19 = int_to_ptr.vmem [resolvable:$true] %s18_s19 }
   0x2   :  { %s519_s21 = smov 8  }
   0x3   :  { %24 = dma.hbm_to_vmem [thread:$0]  %s17_s17, 512, %s19_s19, [#allocation3], %s518_s20, %s518_s20, %s519_s21  }
   0x4   :  { %515 = dma.done.wait [#allocation3], 512  }
   0x5   :  { %516 = vsyncadd [#allocation3], 4294966784  ;;  %v520_v0 = vmov 0   ;;  %v40_v1 = vld [vmem:[%s663_s0 + $0x28] sm:$0xff]  ;;  %v94_v3 = vld [vmem:[#allocation2 + $0x18] sm:$0xff]  ;;  %v33_v17 = vlaneseq  ;;  %vm95_vm0 = vcmask 261120  }
   0x6   :  { %467 = vset.pattern.permute.xlu0 %v520_v0  ;;  %469 = vset.pattern.permute.xlu2 %v520_v0  ;;  %v36_v2 = vld [vmem:[%s663_s0 + $0x8] sm:$0xff]  ;;  %v41_v4 = vld [vmem:[%s663_s0 + $0x30] sm:$0xff]  ;;  %v35_v7 = vld [vmem:[%s663_s0] sm:$0xff]  ;;  %v521_v20 = vmov 0.0  }
   0x7   :  { %468 = vset.pattern.permute.xlu1 %v520_v0  ;;  %59 = vperm.xlu0 %467, %v40_v1   ;;  %v93_v5 = vld [vmem:[#allocation2 + $0x10] sm:$0xff]  ;;  %v92_v6 = vld [vmem:[#allocation2 + $0x8] sm:$0xff]  ;;  %v38_v9 = vld [vmem:[%s663_s0 + $0x18] sm:$0xff]  ;;  %v34_v18 = vand.u32 127, %v33_v17 }
   0x8   :  { %47 = vperm.xlu2 %469, %v36_v2   ;;  %453 = vmatpush.msra.mxu1 %v94_v3  ;;  %v37_v8 = vld [vmem:[%s663_s0 + $0x10] sm:$0xff]  ;;  %v91_v10 = vld [vmem:[#allocation2] sm:$0xff]  ;;  %v572_v11 = vld [vmem:[%s665_s2 + $0x18] sm:$0xff] }
   0x9   :  { %62 = vperm.xlu1 %468, %v41_v4   ;;  %132 = vmatpush.msra.mxu0 %v94_v3  ;;  %v577_v12 = vld [vmem:[%s665_s2 + $0x10] sm:$0xff]  ;;  %v42_v13 = vld [vmem:[%s663_s0 + $0x38] sm:$0xff]  ;;  %v586_v14 = vld [vmem:[%s665_s2 + $0x8] sm:$0xff] }
   0xa   :  { %455 = vmatpush.msra.mxu1 %v93_v5  ;;  %454 = vmatpush.msra.mxu2 %v94_v3  ;;  %v597_v15 = vld [vmem:[%s665_s2] sm:$0xff]  ;;  %v397_v17 = vld [vmem:[%s666_s3 + $0x18] sm:$0xff] }
   0xb   :  { %133 = vmatpush.msra.mxu0 %v93_v5  ;;  %230 = vmatpush.msra.mxu3 %v572_v11  ;;  %v39_v16 = vld [vmem:[%s663_s0 + $0x20] sm:$0xff] }
   0xc   :  { %457 = vmatpush.msra.mxu1 %v92_v6  ;;  %456 = vmatpush.msra.mxu2 %v93_v5  ;;  %v522_v5 = vmov 32.0  }
   0xd   :  { %134 = vmatpush.msra.mxu0 %v92_v6  ;;  %231 = vmatpush.msra.mxu3 %v577_v12 }
   0xe   :  { %458 = vmatpush.msra.mxu2 %v92_v6  ;;  %459 = vmatpush.msra.mxu1 %v91_v10 }
   0xf   :  { %44 = vperm.xlu0 %467, %v35_v7   ;;  %135 = vmatpush.msra.mxu0 %v91_v10 }
  0x10   :  { %50 = vperm.xlu2 %469, %v37_v8   ;;  %460 = vmatpush.msra.mxu2 %v91_v10 }
  0x11   :  { %180 = vmatpush.msrb.mxu1 %v572_v11  ;;  %65 = vperm.xlu1 %468, %v42_v13  }
  0x12   :  { %205 = vmatpush.msrb.mxu2 %v572_v11  ;;  %232 = vmatpush.msra.mxu3 %v586_v14 }
  0x13   :  { %181 = vmatpush.msrb.mxu1 %v577_v12 }
  0x14   :  { %206 = vmatpush.msrb.mxu2 %v577_v12  ;;  %233 = vmatpush.msra.mxu3 %v597_v15 }
  0x15   :  { %182 = vmatpush.msrb.mxu1 %v586_v14 }
  0x16   :  { %207 = vmatpush.msrb.mxu2 %v586_v14  ;;  %305 = vmatpush.msrb.mxu3 %v572_v11 }
  0x17   :  { %53 = vperm.xlu0 %467, %v38_v9   ;;  %183 = vmatpush.msrb.mxu1 %v597_v15 }
  0x18   :  { %208 = vmatpush.msrb.mxu2 %v597_v15  ;;  %306 = vmatpush.msrb.mxu3 %v577_v12 }
  0x19   :  { %56 = vperm.xlu1 %468, %v39_v16  }
  0x1a   :  { %307 = vmatpush.msrb.mxu3 %v586_v14 }
  0x1c   :  { %308 = vmatpush.msrb.mxu3 %v597_v15 }
  0x62   :  { %v48_v25 = vpop.permute.xlu2 %47 }
  0x63   :  { %vm68_vm4 = vcmp.eq.s32.totalorder %v48_v25, %v34_v18 }
  0x64   :  { %v430_v27 = vsel %vm68_vm4, 1.0, %v521_v20 }
  0x6a   :  { %v51_v28 = vpop.permute.xlu2 %50 }
  0x6b   :  { %vm69_vm5 = vcmp.eq.s32.totalorder %v51_v28, %v34_v18 }
  0x6c   :  { %v431_v29 = vsel %vm69_vm5, 1.0, %v521_v20 }
  0x79   :  { %v60_v19 = vpop.permute.xlu0 %59 }
  0x7a   :  { %vm72_vm1 = vcmp.eq.s32.totalorder %v60_v19, %v34_v18  ;;  %v395_v19 = vld [vmem:[%s666_s3 + $0x8] sm:$0xff] }
  0x7b   :  { %v434_v21 = vsel %vm72_vm1, 1.0, %v521_v20  ;;  %v63_v22 = vpop.permute.xlu1 %62 }
  0x7c   :  { %442 = vmatmul.msk.f32.vlgmr.msra.gmra.mxu1 %vm95_vm0, %v434_v21  ;;  %vm73_vm2 = vcmp.eq.s32.totalorder %v63_v22, %v34_v18 }
  0x7d   :  { %255 = vmatpush.msra.mxu1 %v572_v11  ;;  %v435_v23 = vsel %vm73_vm2, 1.0, %v521_v20 }
  0x7e   :  { %443 = vmatmul.msk.f32.vlgmr.msra.gmra.mxu2 %vm95_vm0, %v435_v23 }
  0x7f   :  { %256 = vmatpush.msra.mxu1 %v577_v12  ;;  %280 = vmatpush.msra.mxu2 %v572_v11 }
  0x81   :  { %v45_v24 = vpop.permute.xlu0 %44  ;;  %257 = vmatpush.msra.mxu1 %v586_v14  ;;  %281 = vmatpush.msra.mxu2 %v577_v12 }
  0x82   :  { %vm67_vm3 = vcmp.eq.s32.totalorder %v45_v24, %v34_v18 }
  0x83   :  { %v429_v26 = vsel %vm67_vm3, 1.0, %v521_v20  ;;  %258 = vmatpush.msra.mxu1 %v597_v15  ;;  %282 = vmatpush.msra.mxu2 %v586_v14  ;;  %v66_v32 = vpop.permute.xlu1 %65 }
  0x84   :  { %437 = vmatmul.msk.f32.vlgmr.msra.gmra.mxu0 %vm95_vm0, %v429_v26  ;;  %184 = vmatmul.f32.vlgmr.msrb.gmra.mxu1 %v521_v20  ;;  %vm74_vm7 = vcmp.eq.s32.totalorder %v66_v32, %v34_v18  ;;  %v470_v32 = vld [vmem:[%s666_s3 + $0x20] ss:$0 sm:$0xff] }
  0x85   :  { %330 = vmatpush.msrb.mxu1 %v572_v11  ;;  %283 = vmatpush.msra.mxu2 %v597_v15  ;;  %v436_v33 = vsel %vm74_vm7, 1.0, %v521_v20 }
  0x86   :  { %444 = vmatmul.msk.f32.gmra.mxu2 %vm95_vm0, %v436_v33 }
  0x87   :  { %331 = vmatpush.msrb.mxu1 %v577_v12 }
  0x89   :  { %332 = vmatpush.msrb.mxu1 %v586_v14  ;;  %v54_v30 = vpop.permute.xlu0 %53 }
  0x8a   :  { %vm70_vm6 = vcmp.eq.s32.totalorder %v54_v30, %v34_v18 }
  0x8b   :  { %333 = vmatpush.msrb.mxu1 %v597_v15  ;;  %v432_v31 = vsel %vm70_vm6, 1.0, %v521_v20  ;;  %v57_v34 = vpop.permute.xlu1 %56 }
  0x8c   :  { %438 = vmatmul.msk.f32.gmra.mxu0 %vm95_vm0, %v430_v27  ;;  %vm71_vm8 = vcmp.eq.s32.totalorder %v57_v34, %v34_v18  ;;  %v396_v18 = vld [vmem:[%s666_s3 + $0x10] sm:$0xff] }
  0x8d   :  { %v433_v35 = vsel %vm71_vm8, 1.0, %v521_v20  ;;  %v394_v20 = vld [vmem:[%s666_s3] sm:$0xff] }
  0x94   :  { %439 = vmatmul.msk.f32.gmra.mxu0 %vm95_vm0, %v431_v29 }
  0x9c   :  { %440 = vmatmul.msk.f32.gmra.mxu0 %vm95_vm0, %v432_v31 }
  0xa4   :  { %441 = vmatmul.msk.f32.gmra.mxu0 %vm95_vm0, %v433_v35 }
  0xf9   :  { %v152_v36 = vpop.f32.mrf.mxu1 }
 0x101   :  { %v137_v37 = vpop.f32.mrf.mxu0  ;;  %v185_v38 = vpop.f32.mrf.mxu1 }
 0x102   :  { %v188_v39 = vadd.f32 %v185_v38, %v137_v37  ;;  %v155_v41 = vpop.f32.mrf.mxu2 }
 0x104   :  { %471 = vtanh.f32 %v188_v39 }
 0x109   :  { %v140_v43 = vpop.f32.mrf.mxu0 }
 0x10a   :  { %v472_v40 = vpop.eup %471  ;;  %v158_v42 = vpop.f32.mrf.mxu2 }
 0x10b   :  { %445 = vmatmul.msk.f32.vlgmr.msrb.gmra.mxu2 %vm95_vm0, %v472_v40 }
 0x10c   :  { %355 = vmatpush.msrb.mxu2 %v572_v11 }
 0x10e   :  { %356 = vmatpush.msrb.mxu2 %v577_v12 }
 0x110   :  { %357 = vmatpush.msrb.mxu2 %v586_v14 }
 0x111   :  { %v143_v47 = vpop.f32.mrf.mxu0 }
 0x112   :  { %358 = vmatpush.msrb.mxu2 %v597_v15 }
 0x119   :  { %v146_v51 = vpop.f32.mrf.mxu0 }
 0x121   :  { %v149_v55 = vpop.f32.mrf.mxu0 }
 0x18e   :  { %v210_v44 = vpop.f32.mrf.mxu2 }
 0x18f   :  { %v213_v45 = vadd.f32 %v210_v44, %v140_v43 }
 0x191   :  { %473 = vtanh.f32 %v213_v45 }
 0x197   :  { %v474_v46 = vpop.eup %473 }
 0x198   :  { %446 = vmatmul.msk.f32.vlgmr.msra.gmra.mxu3 %vm95_vm0, %v474_v46 }
 0x199   :  { %415 = vmatpush.msra.mxu3 %v397_v17 }
 0x19b   :  { %416 = vmatpush.msra.mxu3 %v396_v18 }
 0x19d   :  { %417 = vmatpush.msra.mxu3 %v395_v19 }
 0x19f   :  { %418 = vmatpush.msra.mxu3 %v394_v20 }
 0x21b   :  { %v235_v48 = vpop.f32.mrf.mxu3 }
 0x21c   :  { %v238_v49 = vadd.f32 %v235_v48, %v143_v47 }
 0x21e   :  { %475 = vtanh.f32 %v238_v49 }
 0x224   :  { %v476_v50 = vpop.eup %475 }
 0x225   :  { %447 = vmatmul.msk.f32.vlgmr.msra.gmra.mxu1 %vm95_vm0, %v476_v50 }
 0x2a2   :  { %v260_v52 = vpop.f32.mrf.mxu1 }
 0x2a3   :  { %v263_v53 = vadd.f32 %v260_v52, %v146_v51 }
 0x2a5   :  { %477 = vtanh.f32 %v263_v53 }
 0x2ab   :  { %v478_v54 = vpop.eup %477 }
 0x2ac   :  { %448 = vmatmul.msk.f32.vlgmr.msra.gmra.mxu2 %vm95_vm0, %v478_v54 }
 0x32f   :  { %v285_v56 = vpop.f32.mrf.mxu2 }
 0x330   :  { %v288_v57 = vadd.f32 %v285_v56, %v149_v55 }
 0x332   :  { %479 = vtanh.f32 %v288_v57 }
 0x338   :  { %v480_v58 = vpop.eup %479 }
 0x339   :  { %449 = vmatmul.msk.f32.vlgmr.msrb.gmra.mxu3 %vm95_vm0, %v480_v58 }
 0x3bc   :  { %v310_v59 = vpop.f32.mrf.mxu3 }
 0x3bd   :  { %v313_v60 = vadd.f32 %v310_v59, %v152_v36 }
 0x3bf   :  { %481 = vtanh.f32 %v313_v60 }
 0x3c5   :  { %v482_v61 = vpop.eup %481 }
 0x3c6   :  { %450 = vmatmul.msk.f32.vlgmr.msrb.gmra.mxu1 %vm95_vm0, %v482_v61 }
 0x443   :  { %v335_v62 = vpop.f32.mrf.mxu1 }
 0x444   :  { %v338_v63 = vadd.f32 %v335_v62, %v155_v41 }
 0x446   :  { %483 = vtanh.f32 %v338_v63 }
 0x44c   :  { %v484_v0 = vpop.eup %483 }
 0x44d   :  { %451 = vmatmul.msk.f32.vlgmr.msrb.gmra.mxu2 %vm95_vm0, %v484_v0 }
 0x4d0   :  { %v360_v1 = vpop.f32.mrf.mxu2 }
 0x4d1   :  { %v363_v2 = vadd.f32 %v360_v1, %v158_v42 }
 0x4d3   :  { %485 = vtanh.f32 %v363_v2 }
 0x4d4   :  { %487 = vrcp.f32 %v522_v5 }
 0x4d9   :  { %v486_v3 = vpop.eup %485 }
 0x4da   :  { %v365_v4 = vsel %vm95_vm0, %v486_v3, 0.0  ;;  %v488_v6 = vpop.eup %487 }
 0x4db   :  { %366 = vadd.xlane.f32.xlu2 %v365_v4  ;;  %v369_v7 = vmul.f32 32.0, %v488_v6  ;;  %vm373_vm9 = vweird.f32 %v488_v6 }
 0x4dd   :  { %v370_v8 = vsub.f32 1.0, %v369_v7 }
 0x4df   :  { %v371_v9 = vmul.f32 %v488_v6, %v370_v8 }
 0x4e1   :  { %v372_v10 = vadd.f32 %v488_v6, %v371_v9 }
 0x4e3   :  { %v374_v11 = vsel %vm373_vm9, %v488_v6, %v372_v10 }
 0x54e   :  { %v367_v12 = vpop.xlane.xlu2 %366 }
 0x54f   :  { %v375_v13 = vmul.f32 %v374_v11, %v367_v12 }
 0x551   :  { %v376_v14 = vsub.f32 %v486_v3, %v375_v13 }
 0x553   :  { %v377_v15 = vmul.f32 %v376_v14, %v376_v14 }
 0x555   :  { %v378_v16 = vsel %vm95_vm0, %v377_v15, 0.0 }
 0x556   :  { %379 = vadd.xlane.f32.xlu0 %v378_v16 }
 0x5c9   :  { %v380_v21 = vpop.xlane.xlu0 %379 }
 0x5ca   :  { %v381_v22 = vmul.f32 %v380_v21, %v374_v11 }
 0x5cc   :  { %v382_v23 = vadd.f32 1e-05, %v381_v22 }
 0x5ce   :  { %489 = vrsqrt.f32 %v382_v23  ;;  %vm389_vm11 = vweird.f32 %v382_v23 }
 0x5d4   :  { %v490_v24 = vpop.eup %489 }
 0x5d5   :  { %v384_v25 = vmul.f32 %v490_v24, %v382_v23  ;;  %vm390_vm10 = vweird.f32 %v490_v24 }
 0x5d6   :  { %vm391_vm12 = vmor %vm389_vm11, %vm390_vm10 }
 0x5d7   :  { %v385_v26 = vmul.f32 %v490_v24, %v384_v25 }
 0x5d9   :  { %v386_v27 = vmul.f32 0.5, %v385_v26 }
 0x5db   :  { %v387_v28 = vsub.f32 1.5, %v386_v27 }
 0x5dd   :  { %v388_v29 = vmul.f32 %v490_v24, %v387_v28 }
 0x5df   :  { %v392_v30 = vsel %vm391_vm12, %v490_v24, %v388_v29 }
 0x5e0   :  { %v393_v31 = vmul.f32 %v392_v30, %v376_v14 }
 0x5e2   :  { %452 = vmatmul.msk.f32.vlgmr.msra.gmra.mxu3 %vm95_vm0, %v393_v31 }
 0x665   :  { %v420_v33 = vpop.f32.mrf.mxu3 }
 0x666   :  { %v421_v34 = vadd.f32 %v470_v32, %v420_v33 }
 0x668   :  { %423 = vst [vmem:[%s667_s4] sm:$0xff] %v421_v34 }
 0x669   :  { %428 = vsyncpa [#allocation3], 1 }

</bundles_post_ra>
